<compile_context>
chip_gen: v7x
topology: tpu7x:2x2x1
jax: 0.10.0
libtpu: 0.0.40
codegen_flags: <defaults>
</compile_context>

<pallas_src>
import functools
import math

import jax
import jax.numpy as jnp
from jax.experimental import pallas as pl
from jax.experimental.pallas import tpu as pltpu


NEG_INF = -1e9
_PAR1 = pltpu.CompilerParams(dimension_semantics=("parallel",))


# ----------------------------- small helpers -----------------------------

def _row_tile(M, max_tm=512):
    """Largest row tile: multiple of 8, divides M, <= max_tm, and (when M >= 16) leaves at
    least 2 grid steps so both v7x TensorCores get work."""
    if M % 8 != 0:
        return M          # full-extent fallback (allowed by the (8,128) rule)
    cap = min(max_tm, M // 2 if M >= 16 else M)
    tm = max(8, (cap // 8) * 8)
    while M % tm:
        tm -= 8
    return tm


def _layernorm(y, g, b, eps):
    mean = jnp.mean(y, axis=-1, keepdims=True)
    var = jnp.mean(jnp.square(y - mean), axis=-1, keepdims=True)
    return (y - mean) * jax.lax.rsqrt(var + eps) * g + b


def _bf16(x):
    return x.astype(jnp.bfloat16)


# ----------------------------- Pallas kernels -----------------------------

def _ln_kernel(x_ref, g_ref, b_ref, o_ref, *, eps):
    o_ref[...] = _layernorm(x_ref[...], g_ref[...], b_ref[...], eps)


def layer_norm(x2d, gamma, beta, eps=1e-6):
    """Standalone LayerNorm (only used for the degenerate n_layers == 0 case)."""
    M, D = x2d.shape
    tm = _row_tile(M)
    return pl.pallas_call(
        functools.partial(_ln_kernel, eps=eps),
        out_shape=jax.ShapeDtypeStruct((M, D), jnp.float32),
        grid=(M // tm,),
        in_specs=[pl.BlockSpec((tm, D), lambda i: (i, 0)),
                  pl.BlockSpec((1, D), lambda i: (0, 0)),
                  pl.BlockSpec((1, D), lambda i: (0, 0))],
        out_specs=pl.BlockSpec((tm, D), lambda i: (i, 0)),
        compiler_params=_PAR1,
    )(x2d, gamma.reshape(1, D), beta.reshape(1, D))


def _ffn_ln_kernel(x_ref, w1_ref, b1_ref, w2_ref, b2_ref, g_ref, be_ref, o_ref, *, eps):
    """LayerNorm(x + W2 @ relu(W1 @ x + b1) + b2) — whole FFN sublayer fused, bf16 MXU operands."""
    x = x_ref[...]
    h = jnp.maximum(
        jnp.dot(_bf16(x), w1_ref[...], preferred_element_type=jnp.float32) + b1_ref[...], 0.0)
    y = jnp.dot(_bf16(h), w2_ref[...], preferred_element_type=jnp.float32) + b2_ref[...] + x
    o_ref[...] = _layernorm(y, g_ref[...], be_ref[...], eps)


def positionwise_ffn(p, x, eps=1e-6):
    B, L, D = x.shape
    Di = p["w1"].shape[1]
    M = B * L
    x2 = x.reshape(M, D)
    tm = _row_tile(M)
    out = pl.pallas_call(
        functools.partial(_ffn_ln_kernel, eps=eps),
        out_shape=jax.ShapeDtypeStruct((M, D), jnp.float32),
        grid=(M // tm,),
        in_specs=[pl.BlockSpec((tm, D), lambda i: (i, 0)),
                  pl.BlockSpec((D, Di), lambda i: (0, 0)),
                  pl.BlockSpec((1, Di), lambda i: (0, 0)),
                  pl.BlockSpec((Di, D), lambda i: (0, 0)),
                  pl.BlockSpec((1, D), lambda i: (0, 0)),
                  pl.BlockSpec((1, D), lambda i: (0, 0)),
                  pl.BlockSpec((1, D), lambda i: (0, 0))],
        out_specs=pl.BlockSpec((tm, D), lambda i: (i, 0)),
        compiler_params=_PAR1,
    )(x2, p["w1"], p["b1"].reshape(1, Di), p["w2"], p["b2"].reshape(1, D),
      p["ln_g"].reshape(1, D), p["ln_b"].reshape(1, D))
    return out.reshape(B, L, D)


def _mlp_kernel(x_ref, w1_ref, b1_ref, w2_ref, b2_ref, o_ref):
    """Projection head: Linear -> (Dropout=id) -> ReLU -> Linear, fused; bf16 MXU operands."""
    h = jnp.maximum(
        jnp.dot(_bf16(x_ref[...]), w1_ref[...], preferred_element_type=jnp.float32)
        + b1_ref[...], 0.0)
    o_ref[...] = (jnp.dot(_bf16(h), w2_ref[...], preferred_element_type=jnp.float32)
                  + b2_ref[...])


def mlp_head(x2, w1, b1, w2, b2):
    """w2/b2 are already zero-padded to a multiple of 128 lanes (lane-dense output)."""
    M, D = x2.shape
    Di = w1.shape[1]
    Vp = w2.shape[1]
    tm = _row_tile(M)
    return pl.pallas_call(
        _mlp_kernel,
        out_shape=jax.ShapeDtypeStruct((M, Vp), jnp.float32),
        grid=(M // tm,),
        in_specs=[pl.BlockSpec((tm, D), lambda i: (i, 0)),
                  pl.BlockSpec((D, Di), lambda i: (0, 0)),
                  pl.BlockSpec((1, Di), lambda i: (0, 0)),
                  pl.BlockSpec((Di, Vp), lambda i: (0, 0)),
                  pl.BlockSpec((1, Vp), lambda i: (0, 0))],
        out_specs=pl.BlockSpec((tm, Vp), lambda i: (i, 0)),
        compiler_params=_PAR1,
    )(x2, w1, b1.reshape(1, Di), w2, b2.reshape(1, Vp))


def _mha_tail(q_all, k_all, v_all, keep, wo, residual, g, b, ctx_ref, *,
              H, dk, dv, scale, eps):
    """Per-head softmax(QK^T)V written into a VMEM slab, then ONE wide W_O matmul (K = H*dv),
    residual add and LayerNorm — all inside the kernel."""
    for h in range(H):                                       # static unroll over heads
        q = _bf16(q_all[:, h * dk:(h + 1) * dk])             # (Lq, dk)
        k = _bf16(k_all[:, h * dk:(h + 1) * dk])             # (Lk, dk)
        v = _bf16(v_all[:, h * dv:(h + 1) * dv])             # (Lk, dv)
        s = jax.lax.dot_general(q, k, (((1,), (1,)), ((), ())),
                                preferred_element_type=jnp.float32) * scale
        s = jnp.where(keep, s, NEG_INF)                      # masked_fill semantics
        s = s - jnp.max(s, axis=-1, keepdims=True)
        e = jnp.exp(s)
        p = e * pl.reciprocal(jnp.sum(e, axis=-1, keepdims=True), approx=True)
        ctx_ref[:, h * dv:(h + 1) * dv] = jnp.dot(
            _bf16(p), v, preferred_element_type=jnp.float32)
    y = residual + jnp.dot(_bf16(ctx_ref[...]), wo, preferred_element_type=jnp.float32)
    return _layernorm(y, g, b, eps)


def _self_attn_kernel(x_ref, wqkv_ref, keep_ref, wo_ref, g_ref, b_ref, *rest,
                      H, dk, dv, scale, eps, front_ln):
    if front_ln:
        fg_ref, fb_ref, o_ref, ctx_ref = rest
    else:
        o_ref, ctx_ref = rest
    x = x_ref[0]                                             # (Lq, D) f32
    if front_ln:
        # decoder-front LayerNorm fused into the first layer's QKV kernel
        x = _layernorm(x, fg_ref[...], fb_ref[...], eps)
    L = x.shape[0]
    # fused QKV projection (bf16 operands, f32 accumulate)
    qkv = jnp.dot(_bf16(x), wqkv_ref[...], preferred_element_type=jnp.float32)
    # pad-mask & causal mask built in-kernel (no (B,Lq,Lk) bias in HBM)
    row = jax.lax.broadcasted_iota(jnp.int32, (L, L), 0)
    col = jax.lax.broadcasted_iota(jnp.int32, (L, L), 1)
    keep = (keep_ref[0] > 0.5) & (col <= row)
    o_ref[0] = _mha_tail(qkv[:, :H * dk], qkv[:, H * dk:2 * H * dk], qkv[:, 2 * H * dk:],
                         keep, wo_ref[...], x, g_ref[...], b_ref[...], ctx_ref,
                         H=H, dk=dk, dv=dv, scale=scale, eps=eps)


def _cross_attn_kernel(x_ref, enc_ref, wq_ref, wkv_ref, keep_ref, wo_ref, g_ref, b_ref,
                       o_ref, ctx_ref, *, H, dk, dv, scale, eps):
    x = x_ref[0]                                             # (Lq, D)
    enc = enc_ref[0]                                         # (Lk, D)
    q_all = jnp.dot(_bf16(x), wq_ref[...], preferred_element_type=jnp.float32)
    kv = jnp.dot(_bf16(enc), wkv_ref[...], preferred_element_type=jnp.float32)
    keep = keep_ref[0] > 0.5                                 # (1, Lk) -> broadcast over queries
    o_ref[0] = _mha_tail(q_all, kv[:, :H * dk], kv[:, H * dk:],
                         keep, wo_ref[...], x, g_ref[...], b_ref[...], ctx_ref,
                         H=H, dk=dk, dv=dv, scale=scale, eps=eps)


def self_attn_sublayer(p, x, key_keep, H, dk, dv, front_ln=None, eps=1e-6):
    """Fused: [front LN ->] QKV matmul -> per-head masked softmax attention -> W_O -> +res -> LN."""
    B, L, D = x.shape
    F = p["wqkv"].shape[1]
    args = [x, p["wqkv"], key_keep, p["wo"],
            p["ln_g"].reshape(1, D), p["ln_b"].reshape(1, D)]
    in_specs = [
        pl.BlockSpec((1, L, D), lambda b: (b, 0, 0)),
        pl.BlockSpec((D, F), lambda b: (0, 0)),              # resident bf16 weights
        pl.BlockSpec((1, 1, L), lambda b: (b, 0, 0)),        # (1, Lk) key-pad mask only
        pl.BlockSpec((H * dv, D), lambda b: (0, 0)),
        pl.BlockSpec((1, D), lambda b: (0, 0)),
        pl.BlockSpec((1, D), lambda b: (0, 0)),
    ]
    if front_ln is not None:
        fg, fb = front_ln
        args += [fg.reshape(1, D), fb.reshape(1, D)]
        in_specs += [pl.BlockSpec((1, D), lambda b: (0, 0)),
                     pl.BlockSpec((1, D), lambda b: (0, 0))]
    kern = functools.partial(_self_attn_kernel, H=H, dk=dk, dv=dv,
                             scale=1.0 / math.sqrt(dk), eps=eps,
                             front_ln=front_ln is not None)
    return pl.pallas_call(
        kern,
        out_shape=jax.ShapeDtypeStruct((B, L, D), jnp.float32),
        grid=(B,),
        in_specs=in_specs,
        out_specs=pl.BlockSpec((1, L, D), lambda b: (b, 0, 0)),
        scratch_shapes=[pltpu.VMEM((L, H * dv), jnp.float32)],
        compiler_params=_PAR1,
    )(*args)


def cross_attn_sublayer(p, x, enc, key_keep, H, dk, dv, eps=1e-6):
    B, Lq, D = x.shape
    Lk = enc.shape[1]
    Fq = p["wq"].shape[1]
    Fkv = p["wkv"].shape[1]
    return pl.pallas_call(
        functools.partial(_cross_attn_kernel, H=H, dk=dk, dv=dv,
                          scale=1.0 / math.sqrt(dk), eps=eps),
        out_shape=jax.ShapeDtypeStruct((B, Lq, D), jnp.float32),
        grid=(B,),
        in_specs=[
            pl.BlockSpec((1, Lq, D), lambda b: (b, 0, 0)),
            pl.BlockSpec((1, Lk, D), lambda b: (b, 0, 0)),
            pl.BlockSpec((D, Fq), lambda b: (0, 0)),
            pl.BlockSpec((D, Fkv), lambda b: (0, 0)),
            pl.BlockSpec((1, 1, Lk), lambda b: (b, 0, 0)),
            pl.BlockSpec((H * dv, D), lambda b: (0, 0)),
            pl.BlockSpec((1, D), lambda b: (0, 0)),
            pl.BlockSpec((1, D), lambda b: (0, 0)),
        ],
        out_specs=pl.BlockSpec((1, Lq, D), lambda b: (b, 0, 0)),
        scratch_shapes=[pltpu.VMEM((Lq, H * dv), jnp.float32)],
        compiler_params=_PAR1,
    )(x, enc, p["wq"], p["wkv"], key_keep, p["wo"],
      p["ln_g"].reshape(1, D), p["ln_b"].reshape(1, D))


# ----------------------------- model pieces -----------------------------

def sinusoid_table(n_position, d):
    pos = jnp.arange(n_position, dtype=jnp.float32)[:, None]
    i = jnp.arange(d, dtype=jnp.float32)[None, :]
    angle = pos / jnp.power(10000.0, 2.0 * jnp.floor(i / 2.0) / d)
    return jnp.where((jnp.arange(d)[None, :] % 2) == 0, jnp.sin(angle), jnp.cos(angle))


def decoder_layer(p, x, enc_out, trg_keep, src_keep, H, dk, dv, front_ln=None):
    x = self_attn_sublayer(p["slf"], x, trg_keep, H, dk, dv, front_ln=front_ln)
    x = cross_attn_sublayer(p["enc"], x, enc_out, src_keep, H, dk, dv)
    x = positionwise_ffn(p["ffn"], x)
    return x


def prot_trans_forward(params, cfg, src_seq, trg_seq, src_mask):
    B, Lt = trg_seq.shape
    Ls = src_seq.shape[1]
    D = cfg["d_model"]
    H, dk, dv = cfg["n_head"], cfg["d_k"], cfg["d_v"]

    # Key pad masks only, (B, 1, Lk); causal part is built in-kernel from iota.
    trg_keep = (trg_seq != cfg["trg_pad_idx"]).astype(jnp.float32).reshape(B, 1, Lt)
    src_keep = (src_mask != 0).astype(jnp.float32).reshape(B, 1, Ls)

    # TODO(synk): frozen BERT encoder stubbed: deterministic embedding lookup -> (B, Ls, D)
    enc_out = params["bert_emb"][src_seq]

    # Decoder front: embedding + positional encoding + (dropout=id).  The front LayerNorm is
    # fused into the first layer's self-attention kernel (LN -> QKV matmul).
    x = params["dec_emb"][trg_seq] + params["pos_table"][:Lt][None, :, :]
    if not params["layers"]:
        x = layer_norm(x.reshape(B * Lt, D),
                       params["dec_ln_g"], params["dec_ln_b"]).reshape(B, Lt, D)
    for li, layer_p in enumerate(params["layers"]):
        fl = (params["dec_ln_g"], params["dec_ln_b"]) if li == 0 else None
        x = decoder_layer(layer_p, x, enc_out, trg_keep, src_keep, H, dk, dv, front_ln=fl)

    # trg_word_prj: Linear -> Dropout(id) -> ReLU -> Linear (fused, lane-padded output);
    # scale_prj=False since trg_emb_prj_weight_sharing=False.
    logits = mlp_head(x.reshape(B * Lt, D),
                      params["prj_w1"], params["prj_b1"],
                      params["prj_w2"], params["prj_b2"])
    return logits[:, :cfg["n_trg_vocab"]]                    # (B*Lt, n_trg_vocab)


# ----------------------------- deterministic init -----------------------------

def _xavier(key, shape, dtype=jnp.float32):
    a = math.sqrt(6.0 / (shape[0] + shape[1]))
    return jax.random.uniform(key, shape, jnp.float32, -a, a).astype(dtype)


def init_params(key, cfg):
    D, Di = cfg["d_model"], cfg["d_inner"]
    H, dk, dv = cfg["n_head"], cfg["d_k"], cfg["d_v"]
    V = cfg["n_trg_vocab"]
    Vp = ((V + 127) // 128) * 128                            # lane-pad vocab to 128
    bf16 = jnp.bfloat16
    keys = iter(jax.random.split(key, 128))

    def self_attn_params():
        wq = _xavier(next(keys), (D, H * dk))
        wk = _xavier(next(keys), (D, H * dk))
        wv = _xavier(next(keys), (D, H * dv))
        return {"wqkv": jnp.concatenate([wq, wk, wv], axis=1).astype(bf16),
                "wo": _xavier(next(keys), (H * dv, D), bf16),
                "ln_g": jnp.ones((D,), jnp.float32),
                "ln_b": jnp.zeros((D,), jnp.float32)}

    def cross_attn_params():
        wq = _xavier(next(keys), (D, H * dk))
        wk = _xavier(next(keys), (D, H * dk))
        wv = _xavier(next(keys), (D, H * dv))
        return {"wq": wq.astype(bf16),
                "wkv": jnp.concatenate([wk, wv], axis=1).astype(bf16),
                "wo": _xavier(next(keys), (H * dv, D), bf16),
                "ln_g": jnp.ones((D,), jnp.float32),
                "ln_b": jnp.zeros((D,), jnp.float32)}

    layers = []
    for _ in range(cfg["n_layers"]):
        layers.append({
            "slf": self_attn_params(),
            "enc": cross_attn_params(),
            "ffn": {
                "w1": _xavier(next(keys), (D, Di), bf16),
                "b1": jnp.zeros((Di,), jnp.float32),
                "w2": _xavier(next(keys), (Di, D), bf16),
                "b2": jnp.zeros((D,), jnp.float32),
                "ln_g": jnp.ones((D,), jnp.float32),
                "ln_b": jnp.zeros((D,), jnp.float32),
            },
        })

    prj_w2 = _xavier(next(keys), (Di, V))                    # xavier on the real (Di, V) shape
    prj_w2 = jnp.pad(prj_w2, ((0, 0), (0, Vp - V))).astype(bf16)

    return {
        "bert_emb": _xavier(next(keys), (cfg["src_vocab"], D)),
        "dec_emb": _xavier(next(keys), (cfg["n_trg_vocab"], D)),  # xavier overwrites pad row (matches nn.init loop)
        "pos_table": sinusoid_table(cfg["n_position_trg"], D),
        "dec_ln_g": jnp.ones((D,), jnp.float32),
        "dec_ln_b": jnp.zeros((D,), jnp.float32),
        "layers": layers,
        "prj_w1": _xavier(next(keys), (D, Di), bf16),
        "prj_b1": jnp.zeros((Di,), jnp.float32),
        "prj_w2": prj_w2,
        "prj_b2": jnp.zeros((Vp,), jnp.float32),
    }


# ----------------------------- main -----------------------------

if __name__ == "__main__":
    cfg = dict(
        n_trg_vocab=16, src_vocab=25,
        src_pad_idx=0, trg_pad_idx=0,
        d_model=32, d_word_vec=32, d_inner=64,
        n_layers=2, n_head=4, d_k=8, d_v=8,
        n_position_trg=200,
    )

    key = jax.random.PRNGKey(0)
    k_param, k_src, k_trg = jax.random.split(key, 3)
    params = init_params(k_param, cfg)

    B, Ls, Lt = 2, 16, 8
    src_seq = jax.random.randint(k_src, (B, Ls), 1, cfg["src_vocab"], dtype=jnp.int32)
    trg_seq = jax.random.randint(k_trg, (B, Lt), 1, cfg["n_trg_vocab"], dtype=jnp.int32)
    trg_seq = trg_seq.at[1, -1].set(cfg["trg_pad_idx"])               # one padded target token
    src_mask = jnp.ones((B, Ls), jnp.int32).at[1, -2:].set(0)         # padded source tail

    logits = prot_trans_forward(params, cfg, src_seq, trg_seq, src_mask)
    logits = jax.block_until_ready(logits)
    assert logits.shape == (B * Lt, cfg["n_trg_vocab"]), logits.shape
    assert bool(jnp.all(jnp.isfinite(logits)))
    print("KERNEL_OK")
</pallas_src>

<mosaic_0001>
module attributes {stable_mosaic.version = 11 : i64} {
  func.func @_self_attn_kernel(%arg0: i32, %arg1: memref<1x8x32xf32, #tpu.memory_space<vmem>>, %arg2: memref<32x96xbf16, #tpu.memory_space<vmem>>, %arg3: memref<1x1x8xf32, #tpu.memory_space<vmem>>, %arg4: memref<32x32xbf16, #tpu.memory_space<vmem>>, %arg5: memref<1x32xf32, #tpu.memory_space<vmem>>, %arg6: memref<1x32xf32, #tpu.memory_space<vmem>>, %arg7: memref<1x32xf32, #tpu.memory_space<vmem>>, %arg8: memref<1x32xf32, #tpu.memory_space<vmem>>, %arg9: memref<1x8x32xf32, #tpu.memory_space<vmem>>, %arg10: memref<8x32xf32, #tpu.memory_space<vmem>>) attributes {dimension_semantics = [#tpu.dimension_semantics<parallel>], iteration_bounds = array<i64: 2>, scalar_prefetch = 0 : i64, scratch_operands = 1 : i64, tpu.core_type = #tpu.core_type<tc>, window_params = [{transform_indices = @transform_0, window_bounds = array<i64: 1, 8, 32>}, {pipeline_mode = #tpu.pipeline_mode<synchronous>, transform_indices = @transform_1, window_bounds = array<i64: 32, 96>}, {transform_indices = @transform_2, window_bounds = array<i64: 1, 1, 8>}, {pipeline_mode = #tpu.pipeline_mode<synchronous>, transform_indices = @transform_3, window_bounds = array<i64: 32, 32>}, {pipeline_mode = #tpu.pipeline_mode<synchronous>, transform_indices = @transform_4, window_bounds = array<i64: 1, 32>}, {pipeline_mode = #tpu.pipeline_mode<synchronous>, transform_indices = @transform_5, window_bounds = array<i64: 1, 32>}, {pipeline_mode = #tpu.pipeline_mode<synchronous>, transform_indices = @transform_6, window_bounds = array<i64: 1, 32>}, {pipeline_mode = #tpu.pipeline_mode<synchronous>, transform_indices = @transform_7, window_bounds = array<i64: 1, 32>}, {transform_indices = @transform_8, window_bounds = array<i64: 1, 8, 32>}]} {
    %c0 = arith.constant 0 : index
    %c0_0 = arith.constant 0 : index
    %c0_1 = arith.constant 0 : index
    %0 = vector.load %arg1[%c0, %c0_0, %c0_1] : memref<1x8x32xf32, #tpu.memory_space<vmem>>, vector<1x8x32xf32>
    %1 = vector.shape_cast %0 : vector<1x8x32xf32> to vector<8x32xf32>
    %c0_2 = arith.constant 0 : index
    %c0_3 = arith.constant 0 : index
    %2 = vector.load %arg7[%c0_2, %c0_3] : memref<1x32xf32, #tpu.memory_space<vmem>>, vector<1x32xf32>
    %c0_4 = arith.constant 0 : index
    %c0_5 = arith.constant 0 : index
    %3 = vector.load %arg8[%c0_4, %c0_5] : memref<1x32xf32, #tpu.memory_space<vmem>>, vector<1x32xf32>
    %cst = arith.constant dense<0.000000e+00> : vector<8xf32>
    %4 = vector.multi_reduction <add>, %1, %cst [1] : vector<8x32xf32> to vector<8xf32>
    %5 = vector.shape_cast %4 : vector<8xf32> to vector<8x1xf32>
    %cst_6 = arith.constant 3.200000e+01 : f32
    %6 = vector.broadcast %cst_6 : f32 to vector<8x1xf32>
    %7 = arith.divf %5, %6 : vector<8x1xf32>
    %8 = vector.broadcast %7 : vector<8x1xf32> to vector<8x32xf32>
    %9 = arith.subf %1, %8 : vector<8x32xf32>
    %10 = arith.mulf %9, %9 : vector<8x32xf32>
    %cst_7 = arith.constant dense<0.000000e+00> : vector<8xf32>
    %11 = vector.multi_reduction <add>, %10, %cst_7 [1] : vector<8x32xf32> to vector<8xf32>
    %12 = vector.shape_cast %11 : vector<8xf32> to vector<8x1xf32>
    %cst_8 = arith.constant 3.200000e+01 : f32
    %13 = vector.broadcast %cst_8 : f32 to vector<8x1xf32>
    %14 = arith.divf %12, %13 : vector<8x1xf32>
    %15 = vector.broadcast %7 : vector<8x1xf32> to vector<8x32xf32>
    %16 = arith.subf %1, %15 : vector<8x32xf32>
    %cst_9 = arith.constant 9.99999997E-7 : f32
    %17 = vector.broadcast %cst_9 : f32 to vector<8x1xf32>
    %18 = arith.addf %14, %17 : vector<8x1xf32>
    %19 = math.rsqrt %18 : vector<8x1xf32>
    %20 = vector.broadcast %19 : vector<8x1xf32> to vector<8x32xf32>
    %21 = arith.mulf %16, %20 : vector<8x32xf32>
    %22 = vector.broadcast %2 : vector<1x32xf32> to vector<8x32xf32>
    %23 = arith.mulf %21, %22 : vector<8x32xf32>
    %24 = vector.broadcast %3 : vector<1x32xf32> to vector<8x32xf32>
    %25 = arith.addf %23, %24 : vector<8x32xf32>
    %26 = arith.truncf %25 : vector<8x32xf32> to vector<8x32xbf16>
    %c0_10 = arith.constant 0 : index
    %c0_11 = arith.constant 0 : index
    %27 = vector.load %arg2[%c0_10, %c0_11] : memref<32x96xbf16, #tpu.memory_space<vmem>>, vector<32x96xbf16>
    %cst_12 = arith.constant dense<0.000000e+00> : vector<8x96xf32>
    %28 = tpu.matmul %26, %27, %cst_12 {dimension_numbers = #tpu.dot_dimension_numbers<[1], [0], [0], [1], [0, 0, 1, 1], [], []>} : vector<8x32xbf16>, vector<32x96xbf16>, vector<8x96xf32> -> vector<8x96xf32>
    %29 = tpu.iota {dimensions = array<i32: 0>} : vector<8x8xi32>
    %30 = tpu.iota {dimensions = array<i32: 1>} : vector<8x8xi32>
    %c0_13 = arith.constant 0 : index
    %c0_14 = arith.constant 0 : index
    %c0_15 = arith.constant 0 : index
    %31 = vector.load %arg3[%c0_13, %c0_14, %c0_15] : memref<1x1x8xf32, #tpu.memory_space<vmem>>, vector<1x1x8xf32>
    %32 = vector.shape_cast %31 : vector<1x1x8xf32> to vector<1x8xf32>
    %cst_16 = arith.constant 5.000000e-01 : f32
    %33 = vector.broadcast %cst_16 : f32 to vector<1x8xf32>
    %34 = arith.cmpf ogt, %32, %33 : vector<1x8xf32>
    %35 = arith.cmpi sle, %30, %29 : vector<8x8xi32>
    %36 = vector.broadcast %34 : vector<1x8xi1> to vector<8x8xi1>
    %37 = arith.andi %36, %35 : vector<8x8xi1>
    %38 = vector.extract_strided_slice %28 {offsets = [0, 0], sizes = [8, 32], strides = [1, 1]} : vector<8x96xf32> to vector<8x32xf32>
    %39 = vector.extract_strided_slice %28 {offsets = [0, 32], sizes = [8, 32], strides = [1, 1]} : vector<8x96xf32> to vector<8x32xf32>
    %40 = vector.extract_strided_slice %28 {offsets = [0, 64], sizes = [8, 32], strides = [1, 1]} : vector<8x96xf32> to vector<8x32xf32>
    %c0_17 = arith.constant 0 : index
    %c0_18 = arith.constant 0 : index
    %41 = vector.load %arg4[%c0_17, %c0_18] : memref<32x32xbf16, #tpu.memory_space<vmem>>, vector<32x32xbf16>
    %c0_19 = arith.constant 0 : index
    %c0_20 = arith.constant 0 : index
    %42 = vector.load %arg5[%c0_19, %c0_20] : memref<1x32xf32, #tpu.memory_space<vmem>>, vector<1x32xf32>
    %c0_21 = arith.constant 0 : index
    %c0_22 = arith.constant 0 : index
    %43 = vector.load %arg6[%c0_21, %c0_22] : memref<1x32xf32, #tpu.memory_space<vmem>>, vector<1x32xf32>
    %44 = vector.extract_strided_slice %38 {offsets = [0, 0], sizes = [8, 8], strides = [1, 1]} : vector<8x32xf32> to vector<8x8xf32>
    %45 = arith.truncf %44 : vector<8x8xf32> to vector<8x8xbf16>
    %46 = vector.extract_strided_slice %39 {offsets = [0, 0], sizes = [8, 8], strides = [1, 1]} : vector<8x32xf32> to vector<8x8xf32>
    %47 = arith.truncf %46 : vector<8x8xf32> to vector<8x8xbf16>
    %48 = vector.extract_strided_slice %40 {offsets = [0, 0], sizes = [8, 8], strides = [1, 1]} : vector<8x32xf32> to vector<8x8xf32>
    %49 = arith.truncf %48 : vector<8x8xf32> to vector<8x8xbf16>
    %cst_23 = arith.constant dense<0.000000e+00> : vector<8x8xf32>
    %50 = tpu.matmul %45, %47, %cst_23 {dimension_numbers = #tpu.dot_dimension_numbers<[1], [1], [0], [0], [0, 0, 1, 0], [], []>} : vector<8x8xbf16>, vector<8x8xbf16>, vector<8x8xf32> -> vector<8x8xf32>
    %cst_24 = arith.constant 0.353553385 : f32
    %51 = vector.broadcast %cst_24 : f32 to vector<8x8xf32>
    %52 = arith.mulf %50, %51 : vector<8x8xf32>
    %cst_25 = arith.constant -1.000000e+09 : f32
    %53 = vector.broadcast %cst_25 : f32 to vector<8x8xf32>
    %54 = arith.select %37, %52, %53 : vector<8x8xi1>, vector<8x8xf32>
    %cst_26 = arith.constant dense<0xFF800000> : vector<8xf32>
    %55 = vector.multi_reduction <maximumf>, %54, %cst_26 [1] : vector<8x8xf32> to vector<8xf32>
    %56 = vector.shape_cast %55 : vector<8xf32> to vector<8x1xf32>
    %57 = vector.broadcast %56 : vector<8x1xf32> to vector<8x8xf32>
    %58 = arith.subf %54, %57 : vector<8x8xf32>
    %59 = math.exp %58 : vector<8x8xf32>
    %cst_27 = arith.constant dense<0.000000e+00> : vector<8xf32>
    %60 = vector.multi_reduction <add>, %59, %cst_27 [1] : vector<8x8xf32> to vector<8xf32>
    %61 = vector.shape_cast %60 : vector<8xf32> to vector<8x1xf32>
    %62 = tpu.reciprocal %61 {approx = true} : vector<8x1xf32> -> vector<8x1xf32>
    %63 = vector.broadcast %62 : vector<8x1xf32> to vector<8x8xf32>
    %64 = arith.mulf %59, %63 : vector<8x8xf32>
    %65 = arith.truncf %64 : vector<8x8xf32> to vector<8x8xbf16>
    %cst_28 = arith.constant dense<0.000000e+00> : vector<8x8xf32>
    %66 = tpu.matmul %65, %49, %cst_28 {dimension_numbers = #tpu.dot_dimension_numbers<[1], [0], [0], [1], [0, 0, 1, 1], [], []>} : vector<8x8xbf16>, vector<8x8xbf16>, vector<8x8xf32> -> vector<8x8xf32>
    %c0_29 = arith.constant 0 : index
    %c0_30 = arith.constant 0 : index
    %67 = vector.load %arg10[%c0_29, %c0_30] : memref<8x32xf32, #tpu.memory_space<vmem>>, vector<8x8xf32>
    tpu.vector_store %arg10[%c0_29, %c0_30], %66 {strides = array<i32>} : memref<8x32xf32, #tpu.memory_space<vmem>>, vector<8x8xf32>,
    %68 = vector.extract_strided_slice %38 {offsets = [0, 8], sizes = [8, 8], strides = [1, 1]} : vector<8x32xf32> to vector<8x8xf32>
    %69 = arith.truncf %68 : vector<8x8xf32> to vector<8x8xbf16>
    %70 = vector.extract_strided_slice %39 {offsets = [0, 8], sizes = [8, 8], strides = [1, 1]} : vector<8x32xf32> to vector<8x8xf32>
    %71 = arith.truncf %70 : vector<8x8xf32> to vector<8x8xbf16>
    %72 = vector.extract_strided_slice %40 {offsets = [0, 8], sizes = [8, 8], strides = [1, 1]} : vector<8x32xf32> to vector<8x8xf32>
    %73 = arith.truncf %72 : vector<8x8xf32> to vector<8x8xbf16>
    %cst_31 = arith.constant dense<0.000000e+00> : vector<8x8xf32>
    %74 = tpu.matmul %69, %71, %cst_31 {dimension_numbers = #tpu.dot_dimension_numbers<[1], [1], [0], [0], [0, 0, 1, 0], [], []>} : vector<8x8xbf16>, vector<8x8xbf16>, vector<8x8xf32> -> vector<8x8xf32>
    %cst_32 = arith.constant 0.353553385 : f32
    %75 = vector.broadcast %cst_32 : f32 to vector<8x8xf32>
    %76 = arith.mulf %74, %75 : vector<8x8xf32>
    %cst_33 = arith.constant -1.000000e+09 : f32
    %77 = vector.broadcast %cst_33 : f32 to vector<8x8xf32>
    %78 = arith.select %37, %76, %77 : vector<8x8xi1>, vector<8x8xf32>
    %cst_34 = arith.constant dense<0xFF800000> : vector<8xf32>
    %79 = vector.multi_reduction <maximumf>, %78, %cst_34 [1] : vector<8x8xf32> to vector<8xf32>
    %80 = vector.shape_cast %79 : vector<8xf32> to vector<8x1xf32>
    %81 = vector.broadcast %80 : vector<8x1xf32> to vector<8x8xf32>
    %82 = arith.subf %78, %81 : vector<8x8xf32>
    %83 = math.exp %82 : vector<8x8xf32>
    %cst_35 = arith.constant dense<0.000000e+00> : vector<8xf32>
    %84 = vector.multi_reduction <add>, %83, %cst_35 [1] : vector<8x8xf32> to vector<8xf32>
    %85 = vector.shape_cast %84 : vector<8xf32> to vector<8x1xf32>
    %86 = tpu.reciprocal %85 {approx = true} : vector<8x1xf32> -> vector<8x1xf32>
    %87 = vector.broadcast %86 : vector<8x1xf32> to vector<8x8xf32>
    %88 = arith.mulf %83, %87 : vector<8x8xf32>
    %89 = arith.truncf %88 : vector<8x8xf32> to vector<8x8xbf16>
    %cst_36 = arith.constant dense<0.000000e+00> : vector<8x8xf32>
    %90 = tpu.matmul %89, %73, %cst_36 {dimension_numbers = #tpu.dot_dimension_numbers<[1], [0], [0], [1], [0, 0, 1, 1], [], []>} : vector<8x8xbf16>, vector<8x8xbf16>, vector<8x8xf32> -> vector<8x8xf32>
    %c0_37 = arith.constant 0 : index
    %c8 = arith.constant 8 : index
    %91 = vector.load %arg10[%c0_37, %c8] : memref<8x32xf32, #tpu.memory_space<vmem>>, vector<8x8xf32>
    tpu.vector_store %arg10[%c0_37, %c8], %90 {strides = array<i32>} : memref<8x32xf32, #tpu.memory_space<vmem>>, vector<8x8xf32>,
    %92 = vector.extract_strided_slice %38 {offsets = [0, 16], sizes = [8, 8], strides = [1, 1]} : vector<8x32xf32> to vector<8x8xf32>
    %93 = arith.truncf %92 : vector<8x8xf32> to vector<8x8xbf16>
    %94 = vector.extract_strided_slice %39 {offsets = [0, 16], sizes = [8, 8], strides = [1, 1]} : vector<8x32xf32> to vector<8x8xf32>
    %95 = arith.truncf %94 : vector<8x8xf32> to vector<8x8xbf16>
    %96 = vector.extract_strided_slice %40 {offsets = [0, 16], sizes = [8, 8], strides = [1, 1]} : vector<8x32xf32> to vector<8x8xf32>
    %97 = arith.truncf %96 : vector<8x8xf32> to vector<8x8xbf16>
    %cst_38 = arith.constant dense<0.000000e+00> : vector<8x8xf32>
    %98 = tpu.matmul %93, %95, %cst_38 {dimension_numbers = #tpu.dot_dimension_numbers<[1], [1], [0], [0], [0, 0, 1, 0], [], []>} : vector<8x8xbf16>, vector<8x8xbf16>, vector<8x8xf32> -> vector<8x8xf32>
    %cst_39 = arith.constant 0.353553385 : f32
    %99 = vector.broadcast %cst_39 : f32 to vector<8x8xf32>
    %100 = arith.mulf %98, %99 : vector<8x8xf32>
    %cst_40 = arith.constant -1.000000e+09 : f32
    %101 = vector.broadcast %cst_40 : f32 to vector<8x8xf32>
    %102 = arith.select %37, %100, %101 : vector<8x8xi1>, vector<8x8xf32>
    %cst_41 = arith.constant dense<0xFF800000> : vector<8xf32>
    %103 = vector.multi_reduction <maximumf>, %102, %cst_41 [1] : vector<8x8xf32> to vector<8xf32>
    %104 = vector.shape_cast %103 : vector<8xf32> to vector<8x1xf32>
    %105 = vector.broadcast %104 : vector<8x1xf32> to vector<8x8xf32>
    %106 = arith.subf %102, %105 : vector<8x8xf32>
    %107 = math.exp %106 : vector<8x8xf32>
    %cst_42 = arith.constant dense<0.000000e+00> : vector<8xf32>
    %108 = vector.multi_reduction <add>, %107, %cst_42 [1] : vector<8x8xf32> to vector<8xf32>
    %109 = vector.shape_cast %108 : vector<8xf32> to vector<8x1xf32>
    %110 = tpu.reciprocal %109 {approx = true} : vector<8x1xf32> -> vector<8x1xf32>
    %111 = vector.broadcast %110 : vector<8x1xf32> to vector<8x8xf32>
    %112 = arith.mulf %107, %111 : vector<8x8xf32>
    %113 = arith.truncf %112 : vector<8x8xf32> to vector<8x8xbf16>
    %cst_43 = arith.constant dense<0.000000e+00> : vector<8x8xf32>
    %114 = tpu.matmul %113, %97, %cst_43 {dimension_numbers = #tpu.dot_dimension_numbers<[1], [0], [0], [1], [0, 0, 1, 1], [], []>} : vector<8x8xbf16>, vector<8x8xbf16>, vector<8x8xf32> -> vector<8x8xf32>
    %c0_44 = arith.constant 0 : index
    %c16 = arith.constant 16 : index
    %115 = vector.load %arg10[%c0_44, %c16] : memref<8x32xf32, #tpu.memory_space<vmem>>, vector<8x8xf32>
    tpu.vector_store %arg10[%c0_44, %c16], %114 {strides = array<i32>} : memref<8x32xf32, #tpu.memory_space<vmem>>, vector<8x8xf32>,
    %116 = vector.extract_strided_slice %38 {offsets = [0, 24], sizes = [8, 8], strides = [1, 1]} : vector<8x32xf32> to vector<8x8xf32>
    %117 = arith.truncf %116 : vector<8x8xf32> to vector<8x8xbf16>
    %118 = vector.extract_strided_slice %39 {offsets = [0, 24], sizes = [8, 8], strides = [1, 1]} : vector<8x32xf32> to vector<8x8xf32>
    %119 = arith.truncf %118 : vector<8x8xf32> to vector<8x8xbf16>
    %120 = vector.extract_strided_slice %40 {offsets = [0, 24], sizes = [8, 8], strides = [1, 1]} : vector<8x32xf32> to vector<8x8xf32>
    %121 = arith.truncf %120 : vector<8x8xf32> to vector<8x8xbf16>
    %cst_45 = arith.constant dense<0.000000e+00> : vector<8x8xf32>
    %122 = tpu.matmul %117, %119, %cst_45 {dimension_numbers = #tpu.dot_dimension_numbers<[1], [1], [0], [0], [0, 0, 1, 0], [], []>} : vector<8x8xbf16>, vector<8x8xbf16>, vector<8x8xf32> -> vector<8x8xf32>
    %cst_46 = arith.constant 0.353553385 : f32
    %123 = vector.broadcast %cst_46 : f32 to vector<8x8xf32>
    %124 = arith.mulf %122, %123 : vector<8x8xf32>
    %cst_47 = arith.constant -1.000000e+09 : f32
    %125 = vector.broadcast %cst_47 : f32 to vector<8x8xf32>
    %126 = arith.select %37, %124, %125 : vector<8x8xi1>, vector<8x8xf32>
    %cst_48 = arith.constant dense<0xFF800000> : vector<8xf32>
    %127 = vector.multi_reduction <maximumf>, %126, %cst_48 [1] : vector<8x8xf32> to vector<8xf32>
    %128 = vector.shape_cast %127 : vector<8xf32> to vector<8x1xf32>
    %129 = vector.broadcast %128 : vector<8x1xf32> to vector<8x8xf32>
    %130 = arith.subf %126, %129 : vector<8x8xf32>
    %131 = math.exp %130 : vector<8x8xf32>
    %cst_49 = arith.constant dense<0.000000e+00> : vector<8xf32>
    %132 = vector.multi_reduction <add>, %131, %cst_49 [1] : vector<8x8xf32> to vector<8xf32>
    %133 = vector.shape_cast %132 : vector<8xf32> to vector<8x1xf32>
    %134 = tpu.reciprocal %133 {approx = true} : vector<8x1xf32> -> vector<8x1xf32>
    %135 = vector.broadcast %134 : vector<8x1xf32> to vector<8x8xf32>
    %136 = arith.mulf %131, %135 : vector<8x8xf32>
    %137 = arith.truncf %136 : vector<8x8xf32> to vector<8x8xbf16>
    %cst_50 = arith.constant dense<0.000000e+00> : vector<8x8xf32>
    %138 = tpu.matmul %137, %121, %cst_50 {dimension_numbers = #tpu.dot_dimension_numbers<[1], [0], [0], [1], [0, 0, 1, 1], [], []>} : vector<8x8xbf16>, vector<8x8xbf16>, vector<8x8xf32> -> vector<8x8xf32>
    %c0_51 = arith.constant 0 : index
    %c24 = arith.constant 24 : index
    %139 = vector.load %arg10[%c0_51, %c24] : memref<8x32xf32, #tpu.memory_space<vmem>>, vector<8x8xf32>
    tpu.vector_store %arg10[%c0_51, %c24], %138 {strides = array<i32>} : memref<8x32xf32, #tpu.memory_space<vmem>>, vector<8x8xf32>,
    %c0_52 = arith.constant 0 : index
    %c0_53 = arith.constant 0 : index
    %140 = vector.load %arg10[%c0_52, %c0_53] : memref<8x32xf32, #tpu.memory_space<vmem>>, vector<8x32xf32>
    %141 = arith.truncf %140 : vector<8x32xf32> to vector<8x32xbf16>
    %cst_54 = arith.constant dense<0.000000e+00> : vector<8x32xf32>
    %142 = tpu.matmul %141, %41, %cst_54 {dimension_numbers = #tpu.dot_dimension_numbers<[1], [0], [0], [1], [0, 0, 1, 1], [], []>} : vector<8x32xbf16>, vector<32x32xbf16>, vector<8x32xf32> -> vector<8x32xf32>
    %143 = arith.addf %25, %142 : vector<8x32xf32>
    %cst_55 = arith.constant dense<0.000000e+00> : vector<8xf32>
    %144 = vector.multi_reduction <add>, %143, %cst_55 [1] : vector<8x32xf32> to vector<8xf32>
    %145 = vector.shape_cast %144 : vector<8xf32> to vector<8x1xf32>
    %cst_56 = arith.constant 3.200000e+01 : f32
    %146 = vector.broadcast %cst_56 : f32 to vector<8x1xf32>
    %147 = arith.divf %145, %146 : vector<8x1xf32>
    %148 = vector.broadcast %147 : vector<8x1xf32> to vector<8x32xf32>
    %149 = arith.subf %143, %148 : vector<8x32xf32>
    %150 = arith.mulf %149, %149 : vector<8x32xf32>
    %cst_57 = arith.constant dense<0.000000e+00> : vector<8xf32>
    %151 = vector.multi_reduction <add>, %150, %cst_57 [1] : vector<8x32xf32> to vector<8xf32>
    %152 = vector.shape_cast %151 : vector<8xf32> to vector<8x1xf32>
    %cst_58 = arith.constant 3.200000e+01 : f32
    %153 = vector.broadcast %cst_58 : f32 to vector<8x1xf32>
    %154 = arith.divf %152, %153 : vector<8x1xf32>
    %155 = vector.broadcast %147 : vector<8x1xf32> to vector<8x32xf32>
    %156 = arith.subf %143, %155 : vector<8x32xf32>
    %cst_59 = arith.constant 9.99999997E-7 : f32
    %157 = vector.broadcast %cst_59 : f32 to vector<8x1xf32>
    %158 = arith.addf %154, %157 : vector<8x1xf32>
    %159 = math.rsqrt %158 : vector<8x1xf32>
    %160 = vector.broadcast %159 : vector<8x1xf32> to vector<8x32xf32>
    %161 = arith.mulf %156, %160 : vector<8x32xf32>
    %162 = vector.broadcast %42 : vector<1x32xf32> to vector<8x32xf32>
    %163 = arith.mulf %161, %162 : vector<8x32xf32>
    %164 = vector.broadcast %43 : vector<1x32xf32> to vector<8x32xf32>
    %165 = arith.addf %163, %164 : vector<8x32xf32>
    %c0_60 = arith.constant 0 : index
    %c0_61 = arith.constant 0 : index
    %c0_62 = arith.constant 0 : index
    %166 = vector.load %arg9[%c0_60, %c0_61, %c0_62] : memref<1x8x32xf32, #tpu.memory_space<vmem>>, vector<1x8x32xf32>
    %167 = vector.shape_cast %166 : vector<1x8x32xf32> to vector<8x32xf32>
    %168 = vector.shape_cast %165 : vector<8x32xf32> to vector<1x8x32xf32>
    tpu.vector_store %arg9[%c0_60, %c0_61, %c0_62], %168 {strides = array<i32>} : memref<1x8x32xf32, #tpu.memory_space<vmem>>, vector<1x8x32xf32>,
    return
  }
  func.func @transform_0(%arg0: i32) -> (i32, i32, i32) {
    %c0_i32 = arith.constant 0 : i32
    %c0_i32_0 = arith.constant 0 : i32
    %c0_i32_1 = arith.constant 0 : i32
    return %arg0, %c0_i32, %c0_i32_0 : i32, i32, i32
  }
  func.func @transform_1(%arg0: i32) -> (i32, i32) {
    %c0_i32 = arith.constant 0 : i32
    %c0_i32_0 = arith.constant 0 : i32
    %c0_i32_1 = arith.constant 0 : i32
    return %c0_i32, %c0_i32_0 : i32, i32
  }
  func.func @transform_2(%arg0: i32) -> (i32, i32, i32) {
    %c0_i32 = arith.constant 0 : i32
    %c0_i32_0 = arith.constant 0 : i32
    %c0_i32_1 = arith.constant 0 : i32
    return %arg0, %c0_i32, %c0_i32_0 : i32, i32, i32
  }
  func.func @transform_3(%arg0: i32) -> (i32, i32) {
    %c0_i32 = arith.constant 0 : i32
    %c0_i32_0 = arith.constant 0 : i32
    %c0_i32_1 = arith.constant 0 : i32
    return %c0_i32, %c0_i32_0 : i32, i32
  }
  func.func @transform_4(%arg0: i32) -> (i32, i32) {
    %c0_i32 = arith.constant 0 : i32
    %c0_i32_0 = arith.constant 0 : i32
    %c0_i32_1 = arith.constant 0 : i32
    return %c0_i32, %c0_i32_0 : i32, i32
  }
  func.func @transform_5(%arg0: i32) -> (i32, i32) {
    %c0_i32 = arith.constant 0 : i32
    %c0_i32_0 = arith.constant 0 : i32
    %c0_i32_1 = arith.constant 0 : i32
    return %c0_i32, %c0_i32_0 : i32, i32
  }
  func.func @transform_6(%arg0: i32) -> (i32, i32) {
    %c0_i32 = arith.constant 0 : i32
    %c0_i32_0 = arith.constant 0 : i32
    %c0_i32_1 = arith.constant 0 : i32
    return %c0_i32, %c0_i32_0 : i32, i32
  }
  func.func @transform_7(%arg0: i32) -> (i32, i32) {
    %c0_i32 = arith.constant 0 : i32
    %c0_i32_0 = arith.constant 0 : i32
    %c0_i32_1 = arith.constant 0 : i32
    return %c0_i32, %c0_i32_0 : i32, i32
  }
  func.func @transform_8(%arg0: i32) -> (i32, i32, i32) {
    %c0_i32 = arith.constant 0 : i32
    %c0_i32_0 = arith.constant 0 : i32
    %c0_i32_1 = arith.constant 0 : i32
    return %arg0, %c0_i32, %c0_i32_0 : i32, i32, i32
  }
}

</mosaic_0001>

<bundles_post_ra>
// kernel: tpu_custom_call.1
= control target key start
LH: loop header
LB: loop body
LE: loop exit
PB: predicated region body
PF: predicated region fallthrough
CT: control target
= control target key end

     0   :  { %13 = vsyncpa [#allocation4], 0  ;;  %s1945_s0 = inlined_call_operand.hbm [shape: f32[2,8,32], index: 0, kind: input, shape index: {}]   ;;  %s1946_s1 = inlined_call_operand.hbm [shape: bf16[32,96], index: 1, kind: input, shape index: {}]   ;;  %s1947_s2 = inlined_call_operand.vmem [shape: f32[2,1,8], index: 2, kind: input, shape index: {}]   ;;  %s1948_s3 = inlined_call_operand.hbm [shape: bf16[32,32], index: 3, kind: input, shape index: {}]   ;;  %s1949_s4 = inlined_call_operand.vmem [shape: f32[1,32], index: 4, kind: input, shape index: {}]   ;;  %s1950_s5 = inlined_call_operand.vmem [shape: f32[1,32], index: 5, kind: input, shape index: {}]   ;;  %s1951_s6 = inlined_call_operand.vmem [shape: f32[1,32], index: 6, kind: input, shape index: {}]   ;;  %s1952_s7 = inlined_call_operand.vmem [shape: f32[1,32], index: 7, kind: input, shape index: {}]   ;;  %s1953_s8 = inlined_call_operand.hbm [shape: f32[2,8,32], index: 8, kind: output, shape index: {}]  }
   0x1   :  { %15 = vsyncpa [#allocation4 + $0x1], 0 }
   0x2   :  { %16 = vsyncpa [#allocation7], 0 }
   0x3   :  { %17 = vsyncpa [#allocation5], 0 }
   0x4   :  { %19 = vsyncpa [#allocation5 + $0x1], 0  ;;  %s1600_s27 = smov 0   ;;  %s1602_s28 = smov 0  }
   0x5   :  { %s1604_s29 = smov 0   ;;  %s1606_s30 = smov 0  }
   0x6 LB: > { %s1621_s9 = sadd.s32 4294967295, %s1530_s30   ;;  %s1144_s10 = sadd.s32 4294967294, %s1530_s30   ;;  %s1530_s30 = sphi %s1606_s30, %s1975_s30   ;;  %s1526_s29 = sphi %s1604_s29, %s1974_s29   ;;  %s1522_s28 = sphi %s1602_s28, %s1973_s28   ;;  %s1518_s27 = sphi %s1600_s27, %s1972_s27  }
   0x7   : > { %p45_p0 = scmp.ne.s32.totalorder %s1522_s28, %s1518_s27  ;;  %p1954_p1 = scmp.eq.s32.totalorder %s1621_s9, 0 }
   0x8   : > { %p227_p3 = scmp.eq.s32.totalorder %s1144_s10, 1  ;;  %p1145_p5 = scmp.ge.s32.totalorder %s1530_s30, 1 }
   0x9   : > { %p1630_p4 = por %p1954_p1, %p45_p0  ;;  %p234_p7 = scmp.lt.s32.totalorder %s1530_s30, 3 }
   0xa   : > { %p1635_p6 = por %p227_p3, %p45_p0  ;;  %s1532_s14 = smov [#allocation6]  }
   0xb   : > { %s1957_s11 = scalar_select %p1630_p4, 1, 0 }
   0xc   : > { %s1958_s12 = scalar_select %p1635_p6, 1, 0 }
   0xd   : > { %p1640_p8 = pnand %p1145_p5, %p234_p7  ;;  %s246_s15 = sshll.u32 %s1532_s14, 4  ;;  %s1644_s15 = int_to_ptr.vmem [resolvable:$true] %s246_s15 }
   0xe   : > { %s1533_s17 = smov [#allocation8]   ;;  %s1374_s21 = scalar_lea.hbm %s1946_s1, 256 }
   0xf   : > { %p1276_p9 = pneg %p1640_p8  ;;  %s259_s18 = sshll.u32 %s1533_s17, 4  ;;  %s1655_s18 = int_to_ptr.vmem [resolvable:$true] %s259_s18 }
  0x10   : > { %p1375_p12 = scmp.ne.s32.totalorder %s1946_s1, %s1374_s21  ;;  %p1381_p5 = scmp.lt.u32.totalorder %s1374_s21, %s1946_s1 }
  0x11   : > { %p1651_p11 = pnand %p1276_p9, %p1954_p1 }
  0x13   : > { %p1376_p13 = pneg %p1651_p11 }
  0x15   : > { %p1377_p0 = pnand %p1376_p13, %p1375_p12 }
  0x17   : > { %p1378_p3 = pneg %p1377_p0 }
  0x19   : > { %p1383_p7 = pnand %p1381_p5, %p1378_p3 }
  0x1b   : > { %1386 = shalt.err (!%p1383_p7)
}
  0x1c   : > { %s1387_s26 = scalar_lea.vmem %s1644_s15, 256  ;;  %p1395_p2 = scmp.lt.s32.totalorder %s1644_s15, %s1644_s15 }
  0x1d   : > { %p1388_p9 = scmp.ne.s32.totalorder %s1644_s15, %s1387_s26  ;;  %p1396_p12 = scmp.lt.s32.totalorder %s1387_s26, %s1387_s26 }
  0x1f   : > { %p1390_p10 = pnand %p1388_p9, %p1376_p13  ;;  %p1397_p0 = por %p1396_p12, %p1395_p2 }
  0x21   : > { %p1391_p1 = pneg %p1390_p10 }
  0x23   : > { %p1398_p6 = pnand %p1397_p0, %p1391_p1 }
  0x25   : > { %1401 = shalt.err (!%p1398_p6)
}
  0x26   : > { %s1534_s10 = smov 64   ;;  %s1535_s14 = smov 4  }
  0x27   : > { %1279 = dma.hbm_to_vmem [thread:$0]  (!%p1651_p11), %s1946_s1, 256, %s1644_s15, [#allocation7], %s1534_s10, %s1534_s10, %s1535_s14  }
  0x28   : > { %s1402_s22 = scalar_lea.hbm %s1948_s3, 256 }
  0x29   : > { %p1403_p2 = scmp.ne.s32.totalorder %s1948_s3, %s1402_s22  ;;  %p1409_p10 = scmp.lt.u32.totalorder %s1402_s22, %s1948_s3 }
  0x2b   : > { %p1405_p1 = pnand %p1403_p2, %p1376_p13 }
  0x2d   : > { %p1406_p6 = pneg %p1405_p1 }
  0x2f   : > { %p1411_p3 = pnand %p1409_p10, %p1406_p6 }
  0x31   : > { %1414 = shalt.err (!%p1411_p3)
}
  0x32   : > { %s1415_s15 = scalar_lea.vmem %s1655_s18, 256  ;;  %p1423_p12 = scmp.lt.s32.totalorder %s1655_s18, %s1655_s18 }
  0x33   : > { %p1416_p5 = scmp.ne.s32.totalorder %s1655_s18, %s1415_s15  ;;  %p1424_p0 = scmp.lt.s32.totalorder %s1415_s15, %s1415_s15 }
  0x35   : > { %p1418_p7 = pnand %p1416_p5, %p1376_p13  ;;  %p1425_p2 = por %p1424_p0, %p1423_p12 }
  0x37   : > { %p1419_p9 = pneg %p1418_p7 }
  0x39   : > { %p1426_p1 = pnand %p1425_p2, %p1419_p9 }
  0x3b   : > { %1429 = shalt.err (!%p1426_p1)
}
  0x3c   : > { %1282 = dma.hbm_to_vmem [thread:$0]  (!%p1651_p11), %s1948_s3, 256, %s1655_s18, [#allocation7], %s1534_s10, %s1534_s10, %s1535_s14  }
  0x3d   : > { %s1710_s20 = sadd.s32 1, %s1530_s30   ;;  %s32_s16 = sadd.s32 1, %s1526_s29 }
  0x3e   : > { %s29_s21 = ssub.s32 %s1530_s30, %s1710_s20  ;;  %p39_p13 = scmp.ne.s32.totalorder %s1526_s29, %s1522_s28 }
  0x3f   : > { %p30_p6 = scmp.eq.s32.totalorder %s29_s21, 0  ;;  %p40_p10 = scmp.eq.s32.totalorder %s1530_s30, 0 }
  0x40   : > { %p1961_p3 = scmp.eq.s32.totalorder %s1621_s9, 1  ;;  %p1293_p7 = scmp.lt.s32.totalorder %s1530_s30, 2 }
  0x41   : > { %s1726_s23 = scalar_select %p30_p6, %s1526_s29, %s32_s16  }
  0x42   : > { %p1720_p5 = por %p1961_p3, %p39_p13  ;;  %p41_p9 = por %p40_p10, %p39_p13 }
  0x43   : > { %s285_s24 = sand.u32 1, %s1526_s29   ;;  %s1150_s18 = sshll.u32 %s1530_s30, 7 }
  0x44   : > { %s1962_s22 = scalar_select %p1720_p5, 1, 0 }
  0x45   : > { %s1149_s25 = sshll.u32 %s285_s24, 3  ;;  %s1733_s26 = scalar_lea.hbm %s1945_s0, %s1150_s18 }
  0x46   : > { %s289_s15 = scalar_lea.vmem [#allocation3], %s1149_s25  ;;  %p1737_p11 = pnand %p1293_p7, %p41_p9 }
  0x47   : > { %s296_s17 = sshll.u32 %s289_s15, 4  ;;  %s286_s16 = scalar_lea.sflag [#allocation4], %s285_s24  ;;  %s1735_s17 = int_to_ptr.vmem [resolvable:$true] %s296_s17 }
  0x48   : > { %s1430_s21 = scalar_lea.hbm %s1733_s26, 128  ;;  %p1432_p0 = pneg %p1737_p11 }
  0x49   : > { %p1431_p12 = scmp.ne.s32.totalorder %s1733_s26, %s1430_s21  ;;  %s1435_s10 = scalar_lea.hbm %s1945_s0, 256 }
  0x4a   : > { %p1436_p13 = scmp.lt.u32.totalorder %s1733_s26, %s1945_s0  ;;  %p1437_p6 = scmp.lt.u32.totalorder %s1435_s10, %s1430_s21 }
  0x4b   : > { %p1433_p2 = pnand %p1432_p0, %p1431_p12  ;;  %p1439_p3 = scmp.lt.u32.totalorder %s1430_s21, %s1733_s26 }
  0x4c   : > { %p1438_p10 = por %p1437_p6, %p1436_p13 }
  0x4d   : > { %p1434_p1 = pneg %p1433_p2 }
  0x4e   : > { %p1440_p7 = por %p1439_p3, %p1438_p10 }
  0x50   : > { %p1441_p9 = pnand %p1440_p7, %p1434_p1 }
  0x52   : > { %1444 = shalt.err (!%p1441_p9)
}
  0x53   : > { %s1445_s24 = scalar_lea.vmem %s1735_s17, 128  ;;  %s1536_s18 = smov [#allocation3]  }
  0x54   : > { %p1446_p12 = scmp.ne.s32.totalorder %s1735_s17, %s1445_s24  ;;  %s1450_s25 = sshll.u32 %s1536_s18, 4  ;;  %s1451_s25 = int_to_ptr.vmem [resolvable:$false] %s1450_s25 }
  0x55   : > { %s1452_s14 = scalar_lea.vmem %s1451_s25, 256  ;;  %p1453_p4 = scmp.lt.s32.totalorder %s1735_s17, %s1451_s25 }
  0x56   : > { %p1448_p2 = pnand %p1446_p12, %p1432_p0  ;;  %p1454_p13 = scmp.lt.s32.totalorder %s1452_s14, %s1445_s24 }
  0x58   : > { %p1449_p5 = pneg %p1448_p2  ;;  %p1455_p6 = por %p1454_p13, %p1453_p4 }
  0x5a   : > { %p1456_p10 = pnand %p1455_p6, %p1449_p5 }
  0x5c   : > { %1459 = shalt.err (!%p1456_p10)
}
  0x5d   : > { %1286 = dma.hbm_to_vmem [thread:$0]  (!%p1737_p11), %s1733_s26, 128, %s1735_s17, %s286_s16  }
  0x5e   : > { %311 = sbr.rel (%p1640_p8) target bundleno = 2228 (0x8b4), region = 52  ;;  %s1769_s21 = sand.u32 (!%p1640_p8), 1, %s1522_s28  }
  0x5f   : > { %s1152_s10 = sshll.u32 (!%p1640_p8), %s1769_s21, 3  ;;  %s314_s15 = scalar_lea.sflag (!%p1640_p8), [#allocation4], %s1769_s21 }
  0x60   : > { %s317_s24 = scalar_lea.vmem (!%p1640_p8), [#allocation3], %s1152_s10  ;;  %p1964_p4 = scmp.ne.s32.totalorder (!%p1640_p8), %s1957_s11, 0 }
  0x65   : > { %1505 = dma.done.wait (%p1964_p4), %s314_s15, 128  }
  0x66   : > { %1507 = vsyncadd (%p1964_p4), %s314_s15, 4294967168  ;;  %p1965_p5 = scmp.eq.s32.totalorder %s1621_s9, 0 }
  0x68   : > { %1509 = dma.done.wait (%p1965_p5), [#allocation7], 512   ;;  %p1966_p8 = pmov %p1965_p5 }
  0x69   : > { %vm368_vm0 = vcmask 261120   ;;  %v365_v0 = vld [vmem:[%s317_s24] sm:$0xff]  ;;  %v1350_v7 = vld [vmem:[#allocation6] sm:$0xff]   ;;  %v1537_v8 = vmov 0.0   ;;  %v1351_v9 = vld [vmem:[#allocation6 + $0x8] sm:$0xff]   ;;  %vm1538_vm1 = vmmov 0   ;;  %v457_v36 = vlaneseq }
  0x6a   : > { %1511 = vsyncadd (%p1966_p8), [#allocation7], 4294966784  ;;  %v369_v1 = vsel %vm368_vm0, %v365_v0, 0.0  ;;  %1200 = vmatprep.subr.bf16.mxu0 %v1537_v8  ;;  %1208 = vmatprep.subr.bf16.mxu1 %v1537_v8  ;;  %v1156_v14 = vld [vmem:[%s1951_s6] ss:$0 sm:$0xff]  ;;  %s1539_s19 = smov 120  }
  0x6b   : > { %370 = vadd.xlane.f32.xlu0 %v369_v1  ;;  %1201 = vmatpush3.bf16.msra.mxu0 %v1350_v7  ;;  %v1157_v16 = vld [vmem:[%s1952_s7] ss:$0 sm:$0xff]  ;;  %s1540_s16 = smov 96   ;;  %s1541_s18 = smov 88   ;;  %vm481_vm2 = vcmask 64512   ;;  %v458_v38 = vshrl.u32 %v457_v36, 7 }
  0x6c   : > { %1204 = vmatprep.mubr.msk.bf16.mxu0 %vm1538_vm1, %v1537_v8  ;;  %1202 = vmatprep.subr.bf16.mxu0 %v1537_v8  ;;  %s1542_s25 = smov 80   ;;  %s1543_s14 = smov 112   ;;  %v1546_v40 = vmov 0   ;;  %v460_v42 = vand.u32 127, %v457_v36  ;;  %vm547_vm7 = vcmask 1043456   ;;  %vm708_vm8 = vcmask 130112  }
  0x6d   : > { %1210 = vmatprep.mubr.msk.bf16.mxu1 %vm1538_vm1, %v1537_v8  ;;  %s1544_s15 = smov 72   ;;  %s1545_s24 = smov 104   ;;  %v467_v39 = vsub.s32 0, %v458_v38  ;;  %vm826_vm9 = vcmask 195712   ;;  %vm944_vm10 = vcmask 261312  }
  0x6e   : > { %p361_p11 = scmp.lt.s32.totalorder %s1621_s9, 1  ;;  %vm463_vm4 = vcmp.le.s32.totalorder %v460_v42, %v458_v38  ;;  %p1969_p1 = scmp.ne.s32.totalorder %s1962_s22, 0 }
  0x6f   : > { %1203 = vmatpush3.bf16.msra.mxu0 %v1351_v9 }
  0x70   : > { %1214 = vmatprep.subr.bf16.mxu0 %v1537_v8  ;;  %s362_s11 = scalar_select %p361_p11, %s1621_s9, 1 }
  0x72   : > { %s363_s17 = scalar_lea.vmem %s1947_s2, %s362_s11 }
  0x73   : > { %v461_v37 = vld [vmem:[%s363_s17] sm:$0x1] }
  0x74   : > { %vm462_vm3 = vcmp.gt.f32.partialorder %v461_v37, 0.5 }
  0x75   : > { %v464_v41 = vsel %vm462_vm3, 1, %v1546_v40 }
  0x76   : > { %v468_v43 = vrot.slane %v464_v41, %v467_v39 }
  0x78   : > { %vm469_vm5 = vcmp.eq.s32.totalorder %v468_v43, 1 }
  0x79   : > { %vm1841_vm6 = vmand %vm469_vm5, %vm463_vm4 }
  0xf8   : > { %v371_v2 = vpop.xlane.xlu0 %370 }
  0xf9   : > { %v373_v3 = vmul.f32 0.03125, %v371_v2 }
  0xfb   : > { %v374_v4 = vsub.f32 %v365_v0, %v373_v3 }
  0xfd   : > { %v375_v5 = vmul.f32 %v374_v4, %v374_v4 }
  0xff   : > { %v376_v6 = vsel %vm368_vm0, %v375_v5, 0.0 }
 0x100   : > { %377 = vadd.xlane.f32.xlu0 %v376_v6 }
 0x18d   : > { %v378_v10 = vpop.xlane.xlu0 %377 }
 0x18e   : > { %v379_v11 = vmul.f32 0.03125, %v378_v10 }
 0x190   : > { %v380_v12 = vadd.f32 1e-06, %v379_v11 }
 0x192   : > { %1354 = vrsqrt.f32 %v380_v12 }
 0x19c   : > { %v1355_v13 = vpop.eup %1354 }
 0x19d   : > { %v382_v15 = vmul.f32 %v1355_v13, %v374_v4 }
 0x19f   : > { %v389_v17 = vmul.f32 %v1156_v14, %v382_v15 }
 0x1a1   : > { %v1799_v18 = vadd.f32 %v1157_v16, %v389_v17 }
 0x1a3   : > { %v397_v19 = vpack.c.bf16 %v1799_v18, %v1799_v18 }
 0x1a5   : > { %1205 = vmatmul.mubr.msk.bf16.vlgmr.msra.gmra.mrb[0].mxu0 %vm368_vm0, %v397_v19 }
 0x1a6   : > { %1216 = vmatprep.mubr.msk.bf16.mxu0 %vm1538_vm1, %v1537_v8 }
 0x278   : > { %v451_v20 = vpop.f32.mrb[0].mxu0 }
 0x279   : > { %v1806_v21 = vpack.c.bf16 %v451_v20, %v451_v20  ;;  %v1206_v22 = vpop.f32.mrb[1].mxu0 }
 0x27a   : > { %v454_v23 = vpop.f32.mrb[2].mxu0 }
 0x27b   : > { %592 = vrot.lane.b32.xlu0 %v1806_v21, %s1539_s19  ;;  %479 = vrot.lane.b32.xlu1 %v1806_v21, %s1540_s16  ;;  %v1207_v24 = vpop.f32.mrb[3].mxu0  ;;  %s1547_s19 = smov 64   ;;  %s1548_s16 = smov 56  }
 0x27f   : > { %594 = vrot.lane.b32.xlu1 %v1806_v21, %s1541_s18  ;;  %s1549_s18 = smov 48  }
 0x283   : > { %712 = vrot.lane.b32.xlu1 %v1806_v21, %s1542_s25  ;;  %s1550_s25 = smov 40  }
 0x287   : > { %710 = vrot.lane.b32.xlu1 %v1806_v21, %s1543_s14  ;;  %s1551_s14 = smov 8  }
 0x28b   : > { %830 = vrot.lane.b32.xlu1 %v1806_v21, %s1544_s15  ;;  %s1552_s15 = smov 16  }
 0x28f   : > { %828 = vrot.lane.b32.xlu1 %v1806_v21, %s1545_s24  ;;  %s1553_s24 = smov 24  }
 0x2ed   : > { %v480_v25 = vpop.permute.xlu1 %479  ;;  %v593_v30 = vpop.permute.xlu0 %592 }
 0x2ee   : > { %v486_v26 = vsel %vm481_vm2, %v480_v25, 0 }
 0x2ef   : > { %1209 = vmatpush3.bf16.xpose.msra.mxu1 %v486_v26 }
 0x2f0   : > { %1220 = vmatprep.subr.bf16.mxu1 %v1537_v8 }
 0x2f1   : > { %v595_v27 = vpop.permute.xlu1 %594 }
 0x2f2   : > { %v600_v28 = vsel %vm481_vm2, %v595_v27, 0 }
 0x2f5   : > { %v713_v29 = vpop.permute.xlu1 %712 }
 0x2f6   : > { %1211 = vmatmul.mubr.msk.bf16.vlgmr.msra.gmra.mrb[0].mxu1 %vm481_vm2, %v1806_v21  ;;  %v718_v32 = vsel %vm481_vm2, %v713_v29, 0 }
 0x2f7   : > { %1221 = vmatpush3.bf16.xpose.msra.mxu1 %v600_v28  ;;  %1222 = vmatprep.mubr.msk.bf16.mxu1 %vm1538_vm1, %v1537_v8 }
 0x2f8   : > { %1232 = vmatprep.subr.bf16.mxu1 %v1537_v8 }
 0x2f9   : > { %v711_v31 = vpop.permute.xlu1 %710 }
 0x2fd   : > { %v831_v33 = vpop.permute.xlu1 %830 }
 0x2fe   : > { %1223 = vmatmul.mubr.msk.bf16.vlgmr.msra.gmra.mrb[4].mxu1 %vm481_vm2, %v593_v30  ;;  %v836_v34 = vsel %vm481_vm2, %v831_v33, 0 }
 0x2ff   : > { %1233 = vmatpush3.bf16.xpose.msra.mxu1 %v718_v32  ;;  %1234 = vmatprep.mubr.msk.bf16.mxu1 %vm1538_vm1, %v1537_v8 }
 0x300   : > { %1244 = vmatprep.subr.bf16.mxu1 %v1537_v8 }
 0x301   : > { %v829_v35 = vpop.permute.xlu1 %828 }
 0x306   : > { %1235 = vmatmul.mubr.msk.bf16.vlgmr.msra.gmra.mrb[8].mxu1 %vm481_vm2, %v711_v31 }
 0x307   : > { %1245 = vmatpush3.bf16.xpose.msra.mxu1 %v836_v34  ;;  %1246 = vmatprep.mubr.msk.bf16.mxu1 %vm1538_vm1, %v1537_v8 }
 0x308   : > { %1256 = vmatprep.subr.bf16.mxu1 %v1537_v8 }
 0x30e   : > { %1247 = vmatmul.mubr.msk.bf16.vlgmr.msra.gmra.mrb[12].mxu1 %vm481_vm2, %v829_v35 }
 0x30f   : > { %1260 = vmatprep.mubr.msk.bf16.mxu1 %vm1538_vm1, %v1537_v8 }
 0x3c9   : > { %v522_v44 = vpop.f32.mrb[0].mxu1 }
 0x3ca   : > { %v528_v46 = vmul.f32 0.35355338, %v522_v44  ;;  %v1212_v47 = vpop.f32.mrb[1].mxu1 }
 0x3cb   : > { %v525_v48 = vpop.f32.mrb[2].mxu1 }
 0x3cc   : > { %v1213_v49 = vpop.f32.mrb[3].mxu1  ;;  %v529_v50 = vsel %vm1841_vm6, %v528_v46, -1e+09 }
 0x3cd   : > { %v530_v51 = vsel %vm481_vm2, %v529_v50, -inf }
 0x3ce   : > { %531 = vmax.xlane.f32.xlu1 %v530_v51 }
 0x3d1   : > { %v636_v52 = vpop.f32.mrb[4].mxu1 }
 0x3d2   : > { %v642_v53 = vmul.f32 0.35355338, %v636_v52  ;;  %v1224_v54 = vpop.f32.mrb[5].mxu1 }
 0x3d3   : > { %v639_v55 = vpop.f32.mrb[6].mxu1 }
 0x3d4   : > { %v1225_v56 = vpop.f32.mrb[7].mxu1  ;;  %v643_v57 = vsel %vm1841_vm6, %v642_v53, -1e+09 }
 0x3d5   : > { %v644_v58 = vsel %vm481_vm2, %v643_v57, -inf }
 0x3d6   : > { %645 = vmax.xlane.f32.xlu0 %v644_v58 }
 0x3d9   : > { %v754_v59 = vpop.f32.mrb[8].mxu1 }
 0x3da   : > { %v760_v60 = vmul.f32 0.35355338, %v754_v59  ;;  %v1236_v61 = vpop.f32.mrb[9].mxu1 }
 0x3db   : > { %v757_v62 = vpop.f32.mrb[10].mxu1 }
 0x3dc   : > { %v1237_v63 = vpop.f32.mrb[11].mxu1  ;;  %v761_v0 = vsel %vm1841_vm6, %v760_v60, -1e+09 }
 0x3dd   : > { %v762_v1 = vsel %vm481_vm2, %v761_v0, -inf  ;;  %v1352_v63 = vld [vmem:[#allocation8] sm:$0xff]  }
 0x3de   : > { %763 = vmax.xlane.f32.xlu1 %v762_v1  ;;  %1257 = vmatpush3.bf16.msra.mxu1 %v1352_v63 }
 0x3df   : > { %1258 = vmatprep.subr.bf16.mxu1 %v1537_v8 }
 0x3e1   : > { %v872_v2 = vpop.f32.mrb[12].mxu1 }
 0x3e2   : > { %v878_v3 = vmul.f32 0.35355338, %v872_v2  ;;  %v1248_v4 = vpop.f32.mrb[13].mxu1 }
 0x3e3   : > { %v875_v5 = vpop.f32.mrb[14].mxu1 }
 0x3e4   : > { %v1249_v6 = vpop.f32.mrb[15].mxu1  ;;  %v879_v7 = vsel %vm1841_vm6, %v878_v3, -1e+09 }
 0x3e5   : > { %v880_v9 = vsel %vm481_vm2, %v879_v7, -inf }
 0x3e6   : > { %881 = vmax.xlane.f32.xlu0 %v880_v9 }
 0x45b   : > { %v532_v10 = vpop.xlane.xlu1 %531 }
 0x45c   : > { %v533_v11 = vsub.f32 %v529_v50, %v532_v10 }
 0x45e   : > { %v534_v12 = vmul.f32 1.442695, %v533_v11 }
 0x460   : > { %1356 = vpow2.f32 %v534_v12 }
 0x463   : > { %v646_v13 = vpop.xlane.xlu0 %645 }
 0x464   : > { %v647_v14 = vsub.f32 %v643_v57, %v646_v13 }
 0x466   : > { %v648_v15 = vmul.f32 1.442695, %v647_v14 }
 0x468   : > { %1358 = vpow2.f32 %v648_v15 }
 0x46a   : > { %v1357_v16 = vpop.eup %1356 }
 0x46b   : > { %v536_v17 = vsel %vm481_vm2, %v1357_v16, 0.0  ;;  %v764_v27 = vpop.xlane.xlu1 %763 }
 0x46c   : > { %537 = vadd.xlane.f32.xlu1 %v536_v17  ;;  %v765_v28 = vsub.f32 %v761_v0, %v764_v27  ;;  %v1353_v0 = vld [vmem:[#allocation8 + $0x8] sm:$0xff]  }
 0x46d   : > { %1259 = vmatpush3.bf16.msra.mxu1 %v1353_v0 }
 0x46e   : > { %v766_v29 = vmul.f32 1.442695, %v765_v28 }
 0x472   : > { %v1359_v19 = vpop.eup %1358 }
 0x473   : > { %v882_v20 = vpop.xlane.xlu0 %881  ;;  %v650_v22 = vsel %vm481_vm2, %v1359_v19, 0.0 }
 0x474   : > { %v883_v23 = vsub.f32 %v879_v7, %v882_v20  ;;  %651 = vadd.xlane.f32.xlu0 %v650_v22 }
 0x476   : > { %v884_v24 = vmul.f32 1.442695, %v883_v23 }
 0x478   : > { %1360 = vpow2.f32 %v884_v24 }
 0x479   : > { %1362 = vpow2.f32 %v766_v29 }
 0x47d   : > { %542 = vrot.lane.b32.xlu1 %v1806_v21, %s1547_s19  ;;  %s1175_s19 = sshll.u32 %s1621_s9, 7  ;;  %s1554_s9 = smov [#allocation9]  }
 0x482   : > { %v1361_v25 = vpop.eup %1360 }
 0x483   : > { %v886_v26 = vsel %vm481_vm2, %v1361_v25, 0.0  ;;  %v1363_v30 = vpop.eup %1362 }
 0x484   : > { %887 = vadd.xlane.f32.xlu0 %v886_v26  ;;  %v768_v31 = vsel %vm481_vm2, %v1363_v30, 0.0 }
 0x49a   : > { %656 = vrot.lane.b32.xlu0 %v1806_v21, %s1548_s16  ;;  %s360_s16 = scalar_lea.vmem [#allocation9], %s1152_s10  ;;  %s1464_s10 = sshll.u32 %s1554_s9, 4  ;;  %s1465_s10 = int_to_ptr.vmem [resolvable:$false] %s1464_s10 }
 0x49b   : > { %s1466_s13 = scalar_lea.vmem %s1465_s10, 256 }
 0x4a1   : > { %769 = vadd.xlane.f32.xlu1 %v768_v31 }
 0x4b2   : > { %774 = vrot.lane.b32.xlu1 %v1806_v21, %s1549_s18  ;;  %s1046_s18 = sshll.u32 %s360_s16, 4  ;;  %s1902_s18 = int_to_ptr.vmem [resolvable:$true] %s1046_s18 }
 0x4b3   : > { %s1460_s11 = scalar_lea.vmem %s1902_s18, 128  ;;  %p1467_p9 = scmp.lt.s32.totalorder %s1902_s18, %s1465_s10 }
 0x4b4   : > { %p1461_p0 = scmp.ne.s32.totalorder %s1902_s18, %s1460_s11  ;;  %p1468_p12 = scmp.lt.s32.totalorder %s1466_s13, %s1460_s11 }
 0x4b6   : > { %892 = vrot.lane.b32.xlu1 %v1806_v21, %s1550_s25  ;;  %p1462_p3 = pnand %p1461_p0, %p1969_p1  ;;  %p1469_p2 = por %p1468_p12, %p1467_p9 }
 0x4b8   : > { %p1463_p7 = pneg %p1462_p3 }
 0x4ba   : > { %p1470_p13 = pnand %p1469_p2, %p1463_p7 }
 0x4f9   : > { %v538_v32 = vpop.xlane.xlu1 %537 }
 0x4fa   : > { %1364 = vrcp.f32 %v538_v32  ;;  %v1173_v32 = vld [vmem:[%s1950_s5] ss:$0 sm:$0xff] }
 0x4fd   : > { %v543_v33 = vpop.permute.xlu1 %542 }
 0x4fe   : > { %v549_v34 = vsel %vm547_vm7, %v543_v33, 0 }
 0x4ff   : > { %1215 = vmatpush3.bf16.msra.mxu0 %v549_v34 }
 0x500   : > { %1226 = vmatprep.subr.bf16.mxu0 %v1537_v8 }
 0x501   : > { %v652_v36 = vpop.xlane.xlu0 %651 }
 0x502   : > { %1366 = vrcp.f32 %v652_v36 }
 0x504   : > { %v1365_v35 = vpop.eup %1364 }
 0x505   : > { %v540_v37 = vmul.f32 %v1365_v35, %v1357_v16 }
 0x507   : > { %v541_v38 = vpack.c.bf16 %v540_v37, %v540_v37 }
 0x509   : > { %1217 = vmatmul.mubr.msk.bf16.vlgmr.msra.gmra.mrb[4].mxu0 %vm481_vm2, %v541_v38 }
 0x50a   : > { %1228 = vmatprep.mubr.msk.bf16.mxu0 %vm1538_vm1, %v1537_v8 }
 0x50c   : > { %v1367_v21 = vpop.eup %1366 }
 0x50d   : > { %v654_v40 = vmul.f32 %v1367_v21, %v1359_v19 }
 0x50f   : > { %v655_v43 = vpack.c.bf16 %v654_v40, %v654_v40 }
 0x511   : > { %v888_v39 = vpop.xlane.xlu0 %887 }
 0x515   : > { %v657_v41 = vpop.permute.xlu0 %656 }
 0x516   : > { %v662_v42 = vsel %vm547_vm7, %v657_v41, 0 }
 0x517   : > { %1227 = vmatpush3.bf16.msra.mxu0 %v662_v42 }
 0x518   : > { %1238 = vmatprep.subr.bf16.mxu0 %v1537_v8 }
 0x51a   : > { %1229 = vmatmul.mubr.msk.bf16.vlgmr.msra.gmra.mrb[8].mxu0 %vm481_vm2, %v655_v43 }
 0x51b   : > { %1240 = vmatprep.mubr.msk.bf16.mxu0 %vm1538_vm1, %v1537_v8 }
 0x52e   : > { %v770_v44 = vpop.xlane.xlu1 %769 }
 0x52f   : > { %1368 = vrcp.f32 %v770_v44 }
 0x530   : > { %1370 = vrcp.f32 %v888_v39 }
 0x532   : > { %v775_v45 = vpop.permute.xlu1 %774 }
 0x533   : > { %v780_v46 = vsel %vm547_vm7, %v775_v45, 0 }
 0x534   : > { %1239 = vmatpush3.bf16.msra.mxu0 %v780_v46 }
 0x535   : > { %1250 = vmatprep.subr.bf16.mxu0 %v1537_v8 }
 0x536   : > { %v893_v49 = vpop.permute.xlu1 %892 }
 0x537   : > { %v898_v52 = vsel %vm547_vm7, %v893_v49, 0 }
 0x539   : > { %v1369_v47 = vpop.eup %1368 }
 0x53a   : > { %v772_v48 = vmul.f32 %v1369_v47, %v1363_v30  ;;  %v1371_v51 = vpop.eup %1370  ;;  %v1172_v30 = vld [vmem:[%s1949_s4] ss:$0 sm:$0xff] }
 0x53b   : > { %v890_v53 = vmul.f32 %v1371_v51, %v1361_v25 }
 0x53c   : > { %v773_v50 = vpack.c.bf16 %v772_v48, %v772_v48 }
 0x53d   : > { %v891_v54 = vpack.c.bf16 %v890_v53, %v890_v53 }
 0x53e   : > { %1241 = vmatmul.mubr.msk.bf16.vlgmr.msra.gmra.mrb[12].mxu0 %vm481_vm2, %v773_v50 }
 0x53f   : > { %1251 = vmatpush3.bf16.msra.mxu0 %v898_v52  ;;  %1252 = vmatprep.mubr.msk.bf16.mxu0 %vm1538_vm1, %v1537_v8 }
 0x546   : > { %1253 = vmatmul.mubr.msk.bf16.vlgmr.msra.gmra.mrb[16].mxu0 %vm481_vm2, %v891_v54 }
 0x5dc   : > { %v585_v55 = vpop.f32.mrb[4].mxu0 }
 0x5dd   : > { %591 = vst.msk [vmem:[#allocation2] sm:$0xff] %vm481_vm2, %v585_v55  ;;  %v1218_v56 = vpop.f32.mrb[5].mxu0 }
 0x5de   : > { %v588_v57 = vpop.f32.mrb[6].mxu0 }
 0x5df   : > { %v1219_v58 = vpop.f32.mrb[7].mxu0 }
 0x5ed   : > { %v698_v59 = vpop.f32.mrb[8].mxu0 }
 0x5ee   : > { %705 = vrot.lane.b32.xlu0 %v698_v59, %s1551_s14  ;;  %v1230_v60 = vpop.f32.mrb[9].mxu0 }
 0x5ef   : > { %v701_v61 = vpop.f32.mrb[10].mxu0 }
 0x5f0   : > { %v1231_v62 = vpop.f32.mrb[11].mxu0 }
 0x611   : > { %v816_v1 = vpop.f32.mrb[12].mxu0 }
 0x612   : > { %823 = vrot.lane.b32.xlu1 %v816_v1, %s1552_s15  ;;  %v1242_v2 = vpop.f32.mrb[13].mxu0  ;;  %s1900_s15 = scalar_lea.hbm %s1953_s8, %s1175_s19 }
 0x613   : > { %v819_v3 = vpop.f32.mrb[14].mxu0 }
 0x614   : > { %v1243_v4 = vpop.f32.mrb[15].mxu0 }
 0x619   : > { %v934_v5 = vpop.f32.mrb[16].mxu0 }
 0x61a   : > { %941 = vrot.lane.b32.xlu0 %v934_v5, %s1553_s24  ;;  %v1254_v6 = vpop.f32.mrb[17].mxu0  ;;  %s1033_s24 = scalar_lea.sflag [#allocation5], %s1769_s21 }
 0x61b   : > { %v937_v7 = vpop.f32.mrb[18].mxu0 }
 0x61c   : > { %v1255_v9 = vpop.f32.mrb[19].mxu0 }
 0x660   : > { %v706_v10 = vpop.permute.xlu0 %705 }
 0x661   : > { %709 = vst.msk [vmem:[#allocation2] sm:$0xff] %vm708_vm8, %v706_v10 }
 0x684   : > { %v824_v11 = vpop.permute.xlu1 %823 }
 0x685   : > { %827 = vst.msk [vmem:[#allocation2] sm:$0xff] %vm826_vm9, %v824_v11 }
 0x68c   : > { %v942_v8 = vpop.permute.xlu0 %941 }
 0x68d   : > { %945 = vst.msk [vmem:[#allocation2] sm:$0xff] %vm944_vm10, %v942_v8 }
 0x694   : > { %v946_v12 = vld [vmem:[#allocation2] sm:$0xff] }
 0x695   : > { %v947_v13 = vpack.c.bf16 %v946_v12, %v946_v12 }
 0x697   : > { %1261 = vmatmul.mubr.msk.bf16.vlgmr.msra.gmra.mrb[16].mxu1 %vm368_vm0, %v947_v13 }
 0x76a   : > { %v997_v14 = vpop.f32.mrb[16].mxu1 }
 0x76b   : > { %v1003_v15 = vadd.f32 %v997_v14, %v1799_v18  ;;  %v1262_v16 = vpop.f32.mrb[17].mxu1 }
 0x76c   : > { %v1000_v17 = vpop.f32.mrb[18].mxu1 }
 0x76d   : > { %v1263_v19 = vpop.f32.mrb[19].mxu1  ;;  %v1004_v20 = vsel %vm368_vm0, %v1003_v15, 0.0 }
 0x76e   : > { %1005 = vadd.xlane.f32.xlu1 %v1004_v20 }
 0x7fb   : > { %v1006_v22 = vpop.xlane.xlu1 %1005 }
 0x7fc   : > { %v1007_v23 = vmul.f32 0.03125, %v1006_v22 }
 0x7fe   : > { %v1008_v24 = vsub.f32 %v1003_v15, %v1007_v23 }
 0x800   : > { %v1009_v25 = vmul.f32 %v1008_v24, %v1008_v24 }
 0x802   : > { %v1010_v26 = vsel %vm368_vm0, %v1009_v25, 0.0 }
 0x803   : > { %1011 = vadd.xlane.f32.xlu0 %v1010_v26 }
 0x890   : > { %v1012_v27 = vpop.xlane.xlu0 %1011 }
 0x891   : > { %v1013_v28 = vmul.f32 0.03125, %v1012_v27 }
 0x893   : > { %v1014_v29 = vadd.f32 1e-06, %v1013_v28 }
 0x895   : > { %1372 = vrsqrt.f32 %v1014_v29 }
 0x89f   : > { %v1373_v18 = vpop.eup %1372 }
 0x8a0   : > { %v1016_v31 = vmul.f32 %v1373_v18, %v1008_v24 }
 0x8a2   : > { %v1023_v33 = vmul.f32 %v1172_v30, %v1016_v31 }
 0x8a4   : > { %v1030_v34 = vadd.f32 %v1173_v32, %v1023_v33 }
 0x8a6   : > { %1031 = vst.msk [vmem:[%s360_s16] sm:$0xff] %vm368_vm0, %v1030_v34 }
 0x8a7   : > { %1473 = shalt.err (!%p1470_p13)
}
 0x8a8   : > { %s1474_s21 = scalar_lea.hbm %s1900_s15, 128  ;;  %s1478_s19 = scalar_lea.hbm %s1953_s8, 256 }
 0x8a9   : > { %p1475_p6 = scmp.ne.s32.totalorder %s1900_s15, %s1474_s21  ;;  %p1479_p5 = scmp.lt.u32.totalorder %s1900_s15, %s1953_s8 }
 0x8aa   : > { %p1480_p8 = scmp.lt.u32.totalorder %s1478_s19, %s1474_s21  ;;  %p1482_p0 = scmp.lt.u32.totalorder %s1474_s21, %s1900_s15 }
 0x8ab   : > { %p1476_p10 = pnand %p1475_p6, %p1969_p1 }
 0x8ac   : > { %p1481_p11 = por %p1480_p8, %p1479_p5 }
 0x8ad   : > { %p1477_p4 = pneg %p1476_p10 }
 0x8ae   : > { %p1483_p3 = por %p1482_p0, %p1481_p11 }
 0x8b0   : > { %p1484_p7 = pnand %p1483_p3, %p1477_p4 }
 0x8b2   : > { %1487 = shalt.err (!%p1484_p7)
}
 0x8b3   : > { %1274 = dma.vmem_to_hbm [thread:$0]  (%p1969_p1), %s1902_s18, 128, %s1900_s15, %s1033_s24  }
 0x8b4 PF: > { %s1058_s14 = sand.u32 1, %s1518_s27   ;;  %p1970_p9 = scmp.ne.s32.totalorder %s1958_s12, 0 }
 0x8b5   : > { %p1971_p12 = scmp.ge.s32.totalorder %s1530_s30, 2  ;;  %s1059_s11 = scalar_lea.sflag [#allocation5], %s1058_s14 }
 0x8b7   : > { %p1288_p2 = pnand %p1971_p12, %p1970_p9 }
 0x8b9   : > { %1513 = dma.done.wait (!%p1288_p2), %s1059_s11, 128  }
 0x8ba   : > { %1515 = vsyncadd (!%p1288_p2), %s1059_s11, 4294967168  ;;  %p22_p13 = scmp.ge.s32.totalorder %s1710_s20, 4   ;;  %s1972_s27 = smov %s1522_s28 }
 0x8bb   : > { %s1973_s28 = smov %s1526_s29  ;;  %s1974_s29 = smov %s1726_s23 }
 0x8bc   : > { %s1975_s30 = smov %s1710_s20  ;;  %24 = sbr.rel (!%p22_p13) target bundleno = 6 (0x6), region = 108 }
 0x8c3   :  { %1064 = vsyncpa [#allocation4], 1 }
 0x8c4   :  { %1066 = vsyncpa [#allocation4 + $0x1], 1 }
 0x8c5   :  { %1067 = vsyncpa [#allocation7], 1 }
 0x8c6   :  { %1068 = vsyncpa [#allocation5], 1 }
 0x8c7   :  { %1070 = vsyncpa [#allocation5 + $0x1], 1 }

</bundles_post_ra>
